<compile_context>
chip_gen: v7x
topology: tpu7x:2x2x1
jax: 0.10.0
libtpu: 0.0.40
codegen_flags: <defaults>
</compile_context>

<pallas_src>
import functools

import jax
import jax.numpy as jnp
from jax import lax
from jax.experimental import pallas as pl
from jax.experimental.pallas import tpu as pltpu


def _round_up(x, m):
    return ((x + m - 1) // m) * m


# ----------------------------- Pallas kernel -------------------------------


def fused_head_kernel(h_ref, s_ref, wl_ref, bl_ref, wp_ref, bp_ref,
                      wdt_ref, bd_ref, o_ref, *, use_sigmoid):
    hid = h_ref.shape[-1]
    # linear(cat(h, s)) == h @ W_lin[:H] + s @ W_lin[H:]  (two K=H dots; no
    # (tb, 2H) concat copy in VMEM, works identically on 128- and 256-deep MXUs).
    fused = (jnp.dot(h_ref[...], wl_ref[0:hid, :],
                     preferred_element_type=jnp.float32)
             + jnp.dot(s_ref[...], wl_ref[hid:2 * hid, :],
                       preferred_element_type=jnp.float32)
             + bl_ref[...])                                              # (tb,H) f32
    # dropout: identity in eval mode.
    pooled = jnp.tanh(
        jnp.dot(fused.astype(wp_ref.dtype), wp_ref[...],
                preferred_element_type=jnp.float32) + bp_ref[...])       # (tb,H) f32
    # Dense head computed transposed: (O,H) x (tb,H)^T -> (O,tb).  Batch runs
    # along lanes, so the f32 store is lane-dense with only O*tb useful
    # elements (128x less writeback than a (tb,128) zero-padded block).
    out_t = lax.dot_general(
        wdt_ref[...], pooled.astype(wdt_ref.dtype),
        dimension_numbers=(((1,), (1,)), ((), ())),
        preferred_element_type=jnp.float32) + bd_ref[...]                # (O,tb) f32
    if use_sigmoid:
        out_t = jax.nn.sigmoid(out_t)
    o_ref[...] = out_t.astype(o_ref.dtype)


# ------------------------------ wrapper -------------------------------------


def bert_mlp_head(h_first, s_first, w_lin, b_lin, w_pool, b_pool,
                  w_dense_t, b_dense, *, use_sigmoid, tb=2048):
    """(B,H),(B,H) first-token features -> (B,O) regression output."""
    bsz, hid = h_first.shape
    out_dim = w_dense_t.shape[0]

    # Batch tiling:
    #  * bsz <= tb  -> a single block equal to the full arrays: no padding
    #                  pass, no (8,128) divisibility concern.
    #  * otherwise  -> >=2 grid steps (both v7x TensorCores get work), tile
    #                  rounded to 128 rows so the lane-packed output blocks
    #                  stay lane-aligned, sized to minimise tail padding.
    n_steps = max(pl.cdiv(bsz, tb), 2 if bsz >= 1024 else 1)
    if n_steps == 1:
        tb_eff = bsz
    else:
        tb_eff = _round_up(pl.cdiv(bsz, n_steps), 128)
    b_pad = n_steps * tb_eff
    if b_pad != bsz:
        pad = ((0, b_pad - bsz), (0, 0))
        h_first = jnp.pad(h_first, pad)
        s_first = jnp.pad(s_first, pad)

    kern = functools.partial(fused_head_kernel, use_sigmoid=use_sigmoid)

    flops = 2 * b_pad * hid * (2 * hid + hid + out_dim)
    transcendentals = b_pad * (hid + out_dim)
    bytes_accessed = (
        2 * b_pad * hid * 2                                  # h, s (bf16)
        + (3 * hid * hid + out_dim * hid) * 2                # weights (bf16)
        + (2 * hid + out_dim) * 4                            # biases (f32)
        + out_dim * b_pad * 4                                # packed output (f32)
    )

    out_t = pl.pallas_call(
        kern,
        out_shape=jax.ShapeDtypeStruct((out_dim, b_pad), jnp.float32),
        grid_spec=pl.GridSpec(
            grid=(n_steps,),
            in_specs=[
                pl.BlockSpec((tb_eff, hid), lambda i: (i, 0)),      # h (first tok)
                pl.BlockSpec((tb_eff, hid), lambda i: (i, 0)),      # s (first tok)
                pl.BlockSpec((2 * hid, hid), lambda i: (0, 0)),     # w_lin
                pl.BlockSpec((1, hid), lambda i: (0, 0)),           # b_lin
                pl.BlockSpec((hid, hid), lambda i: (0, 0)),         # w_pool
                pl.BlockSpec((1, hid), lambda i: (0, 0)),           # b_pool
                pl.BlockSpec((out_dim, hid), lambda i: (0, 0)),     # w_dense^T
                pl.BlockSpec((out_dim, 1), lambda i: (0, 0)),       # b_dense
            ],
            out_specs=pl.BlockSpec((out_dim, tb_eff), lambda i: (0, i)),
        ),
        compiler_params=pltpu.CompilerParams(
            dimension_semantics=("parallel",)),
        cost_estimate=pl.CostEstimate(
            flops=flops,
            transcendentals=transcendentals,
            bytes_accessed=bytes_accessed),
    )(h_first, s_first, w_lin, b_lin.reshape(1, hid),
      w_pool, b_pool.reshape(1, hid), w_dense_t, b_dense.reshape(out_dim, 1))

    # (O, b_pad) lane-packed output -> (B, O)
    return out_t[:, :bsz].T


# --------------------------- model (forward) --------------------------------


def init_params(key, *, vocab_size, hidden_dim, output_dim):
    ks = jax.random.split(key, 8)
    s = 0.02
    f32, bf16 = jnp.float32, jnp.bfloat16
    # Matmul operands (embedding tables + weights) are stored in bf16 once at
    # init -- no per-call HBM cast passes; biases stay f32 (added after the
    # f32 MXU accumulation).
    return {
        # TODO(synk): the external pretrained `bert` encoder stack is not
        # reproduced; its last_hidden_state is modeled by a token-embedding table.
        "word_emb": (jax.random.normal(ks[0], (vocab_size, hidden_dim), f32) * s).astype(bf16),
        "structure_emb": (jax.random.normal(ks[1], (10, hidden_dim), f32) * s).astype(bf16),
        "w_lin": (jax.random.normal(ks[2], (2 * hidden_dim, hidden_dim), f32) * s).astype(bf16),
        "b_lin": jax.random.normal(ks[3], (hidden_dim,), f32) * s,
        "w_pool": (jax.random.normal(ks[4], (hidden_dim, hidden_dim), f32) * s).astype(bf16),
        "b_pool": jax.random.normal(ks[5], (hidden_dim,), f32) * s,
        # nn.Linear(H, O) weight pre-transposed to (O, H) for the lane-packed head.
        "w_dense_t": (jax.random.normal(ks[6], (output_dim, hidden_dim), f32) * s).astype(bf16),
        "b_dense": jax.random.normal(ks[7], (output_dim,), f32) * s,
    }


def bert_mlp_forward(params, text_indices, structure, *, use_sigmoid=True):
    # bert(text_indices)['last_hidden_state'] (stand-in: embedding lookup).
    # Only BertPooler's token-0 row is consumed downstream (linear/dropout are
    # position-wise), so gather just the first token of each sequence --
    # mathematically identical to running the fused linear over all B*S tokens
    # and slicing [:, 0, :].  bf16 tables fold the MXU-operand cast into the gather.
    h_first = jnp.take(params["word_emb"],
                       text_indices[:, 0].astype(jnp.int32), axis=0)        # (B,H) bf16
    s_first = jnp.take(params["structure_emb"],
                       structure[:, 0].astype(jnp.int32), axis=0)           # (B,H) bf16

    return bert_mlp_head(
        h_first, s_first,
        params["w_lin"], params["b_lin"],
        params["w_pool"], params["b_pool"],
        params["w_dense_t"], params["b_dense"],
        use_sigmoid=use_sigmoid)                                             # (B,O)


# ------------------------------- main ---------------------------------------


if __name__ == "__main__":
    B, S, H, VOCAB, OUT = 2, 8, 128, 30, 1   # hidden_dim=128, output_dim=1

    key = jax.random.PRNGKey(0)
    k_params, k_text, k_struct = jax.random.split(key, 3)

    params = init_params(k_params, vocab_size=VOCAB, hidden_dim=H, output_dim=OUT)
    text_indices = jax.random.randint(k_text, (B, S), 0, VOCAB, dtype=jnp.int32)
    structure = jax.random.randint(k_struct, (B, S), 0, 10, dtype=jnp.int32)

    fwd = jax.jit(functools.partial(bert_mlp_forward, use_sigmoid=True))
    out = fwd(params, text_indices, structure)
    out = jax.block_until_ready(out)

    assert out.shape == (B, OUT) and out.dtype == jnp.float32
    assert bool(jnp.all(jnp.isfinite(out)))
    print("KERNEL_OK")
</pallas_src>

<mosaic_0001>
module attributes {stable_mosaic.version = 11 : i64} {
  func.func @fused_head_kernel(%arg0: i32, %arg1: memref<2x128xbf16, #tpu.memory_space<vmem>>, %arg2: memref<2x128xbf16, #tpu.memory_space<vmem>>, %arg3: memref<256x128xbf16, #tpu.memory_space<vmem>>, %arg4: memref<1x128xf32, #tpu.memory_space<vmem>>, %arg5: memref<128x128xbf16, #tpu.memory_space<vmem>>, %arg6: memref<1x128xf32, #tpu.memory_space<vmem>>, %arg7: memref<1x128xbf16, #tpu.memory_space<vmem>>, %arg8: memref<1x1xf32, #tpu.memory_space<vmem>>, %arg9: memref<1x2xf32, #tpu.memory_space<vmem>>) attributes {dimension_semantics = [#tpu.dimension_semantics<parallel>], iteration_bounds = array<i64: 1>, scalar_prefetch = 0 : i64, scratch_operands = 0 : i64, tpu.core_type = #tpu.core_type<tc>, window_params = [{transform_indices = @transform_0, window_bounds = array<i64: 2, 128>}, {transform_indices = @transform_1, window_bounds = array<i64: 2, 128>}, {pipeline_mode = #tpu.pipeline_mode<synchronous>, transform_indices = @transform_2, window_bounds = array<i64: 256, 128>}, {pipeline_mode = #tpu.pipeline_mode<synchronous>, transform_indices = @transform_3, window_bounds = array<i64: 1, 128>}, {pipeline_mode = #tpu.pipeline_mode<synchronous>, transform_indices = @transform_4, window_bounds = array<i64: 128, 128>}, {pipeline_mode = #tpu.pipeline_mode<synchronous>, transform_indices = @transform_5, window_bounds = array<i64: 1, 128>}, {pipeline_mode = #tpu.pipeline_mode<synchronous>, transform_indices = @transform_6, window_bounds = array<i64: 1, 128>}, {pipeline_mode = #tpu.pipeline_mode<synchronous>, transform_indices = @transform_7, window_bounds = array<i64: 1, 1>}, {transform_indices = @transform_8, window_bounds = array<i64: 1, 2>}]} {
    %c0 = arith.constant 0 : index
    %c0_0 = arith.constant 0 : index
    %0 = vector.load %arg1[%c0, %c0_0] : memref<2x128xbf16, #tpu.memory_space<vmem>>, vector<2x128xbf16>
    %c0_1 = arith.constant 0 : index
    %c0_2 = arith.constant 0 : index
    %1 = vector.load %arg3[%c0_1, %c0_2] : memref<256x128xbf16, #tpu.memory_space<vmem>>, vector<128x128xbf16>
    %cst = arith.constant dense<0.000000e+00> : vector<2x128xf32>
    %2 = tpu.matmul %0, %1, %cst {dimension_numbers = #tpu.dot_dimension_numbers<[1], [0], [0], [1], [0, 0, 1, 1], [], []>} : vector<2x128xbf16>, vector<128x128xbf16>, vector<2x128xf32> -> vector<2x128xf32>
    %c0_3 = arith.constant 0 : index
    %c0_4 = arith.constant 0 : index
    %3 = vector.load %arg2[%c0_3, %c0_4] : memref<2x128xbf16, #tpu.memory_space<vmem>>, vector<2x128xbf16>
    %c128 = arith.constant 128 : index
    %c0_5 = arith.constant 0 : index
    %4 = vector.load %arg3[%c128, %c0_5] : memref<256x128xbf16, #tpu.memory_space<vmem>>, vector<128x128xbf16>
    %cst_6 = arith.constant dense<0.000000e+00> : vector<2x128xf32>
    %5 = tpu.matmul %3, %4, %cst_6 {dimension_numbers = #tpu.dot_dimension_numbers<[1], [0], [0], [1], [0, 0, 1, 1], [], []>} : vector<2x128xbf16>, vector<128x128xbf16>, vector<2x128xf32> -> vector<2x128xf32>
    %6 = arith.addf %2, %5 : vector<2x128xf32>
    %c0_7 = arith.constant 0 : index
    %c0_8 = arith.constant 0 : index
    %7 = vector.load %arg4[%c0_7, %c0_8] : memref<1x128xf32, #tpu.memory_space<vmem>>, vector<1x128xf32>
    %8 = vector.broadcast %7 : vector<1x128xf32> to vector<2x128xf32>
    %9 = arith.addf %6, %8 : vector<2x128xf32>
    %10 = arith.truncf %9 : vector<2x128xf32> to vector<2x128xbf16>
    %c0_9 = arith.constant 0 : index
    %c0_10 = arith.constant 0 : index
    %11 = vector.load %arg5[%c0_9, %c0_10] : memref<128x128xbf16, #tpu.memory_space<vmem>>, vector<128x128xbf16>
    %cst_11 = arith.constant dense<0.000000e+00> : vector<2x128xf32>
    %12 = tpu.matmul %10, %11, %cst_11 {dimension_numbers = #tpu.dot_dimension_numbers<[1], [0], [0], [1], [0, 0, 1, 1], [], []>} : vector<2x128xbf16>, vector<128x128xbf16>, vector<2x128xf32> -> vector<2x128xf32>
    %c0_12 = arith.constant 0 : index
    %c0_13 = arith.constant 0 : index
    %13 = vector.load %arg6[%c0_12, %c0_13] : memref<1x128xf32, #tpu.memory_space<vmem>>, vector<1x128xf32>
    %14 = vector.broadcast %13 : vector<1x128xf32> to vector<2x128xf32>
    %15 = arith.addf %12, %14 : vector<2x128xf32>
    %16 = math.tanh %15 : vector<2x128xf32>
    %c0_14 = arith.constant 0 : index
    %c0_15 = arith.constant 0 : index
    %17 = vector.load %arg7[%c0_14, %c0_15] : memref<1x128xbf16, #tpu.memory_space<vmem>>, vector<1x128xbf16>
    %18 = arith.truncf %16 : vector<2x128xf32> to vector<2x128xbf16>
    %cst_16 = arith.constant dense<0.000000e+00> : vector<1x2xf32>
    %19 = tpu.matmul %17, %18, %cst_16 {dimension_numbers = #tpu.dot_dimension_numbers<[1], [1], [0], [0], [0, 0, 1, 0], [], []>} : vector<1x128xbf16>, vector<2x128xbf16>, vector<1x2xf32> -> vector<1x2xf32>
    %c0_17 = arith.constant 0 : index
    %c0_18 = arith.constant 0 : index
    %20 = vector.load %arg8[%c0_17, %c0_18] : memref<1x1xf32, #tpu.memory_space<vmem>>, vector<1x1xf32>
    %21 = vector.broadcast %20 : vector<1x1xf32> to vector<1x2xf32>
    %22 = arith.addf %19, %21 : vector<1x2xf32>
    %23 = arith.negf %22 : vector<1x2xf32>
    %24 = math.exp %23 : vector<1x2xf32>
    %cst_19 = arith.constant 1.000000e+00 : f32
    %25 = vector.broadcast %cst_19 : f32 to vector<1x2xf32>
    %26 = arith.addf %25, %24 : vector<1x2xf32>
    %27 = arith.divf %25, %26 : vector<1x2xf32>
    %c0_20 = arith.constant 0 : index
    %c0_21 = arith.constant 0 : index
    %28 = vector.load %arg9[%c0_20, %c0_21] : memref<1x2xf32, #tpu.memory_space<vmem>>, vector<1x2xf32>
    tpu.vector_store %arg9[%c0_20, %c0_21], %27 {strides = array<i32>} : memref<1x2xf32, #tpu.memory_space<vmem>>, vector<1x2xf32>,
    return
  }
  func.func @transform_0(%arg0: i32) -> (i32, i32) {
    %c0_i32 = arith.constant 0 : i32
    %c0_i32_0 = arith.constant 0 : i32
    return %arg0, %c0_i32 : i32, i32
  }
  func.func @transform_1(%arg0: i32) -> (i32, i32) {
    %c0_i32 = arith.constant 0 : i32
    %c0_i32_0 = arith.constant 0 : i32
    return %arg0, %c0_i32 : i32, i32
  }
  func.func @transform_2(%arg0: i32) -> (i32, i32) {
    %c0_i32 = arith.constant 0 : i32
    %c0_i32_0 = arith.constant 0 : i32
    %c0_i32_1 = arith.constant 0 : i32
    return %c0_i32, %c0_i32_0 : i32, i32
  }
  func.func @transform_3(%arg0: i32) -> (i32, i32) {
    %c0_i32 = arith.constant 0 : i32
    %c0_i32_0 = arith.constant 0 : i32
    %c0_i32_1 = arith.constant 0 : i32
    return %c0_i32, %c0_i32_0 : i32, i32
  }
  func.func @transform_4(%arg0: i32) -> (i32, i32) {
    %c0_i32 = arith.constant 0 : i32
    %c0_i32_0 = arith.constant 0 : i32
    %c0_i32_1 = arith.constant 0 : i32
    return %c0_i32, %c0_i32_0 : i32, i32
  }
  func.func @transform_5(%arg0: i32) -> (i32, i32) {
    %c0_i32 = arith.constant 0 : i32
    %c0_i32_0 = arith.constant 0 : i32
    %c0_i32_1 = arith.constant 0 : i32
    return %c0_i32, %c0_i32_0 : i32, i32
  }
  func.func @transform_6(%arg0: i32) -> (i32, i32) {
    %c0_i32 = arith.constant 0 : i32
    %c0_i32_0 = arith.constant 0 : i32
    %c0_i32_1 = arith.constant 0 : i32
    return %c0_i32, %c0_i32_0 : i32, i32
  }
  func.func @transform_7(%arg0: i32) -> (i32, i32) {
    %c0_i32 = arith.constant 0 : i32
    %c0_i32_0 = arith.constant 0 : i32
    %c0_i32_1 = arith.constant 0 : i32
    return %c0_i32, %c0_i32_0 : i32, i32
  }
  func.func @transform_8(%arg0: i32) -> (i32, i32) {
    %c0_i32 = arith.constant 0 : i32
    %c0_i32_0 = arith.constant 0 : i32
    return %c0_i32, %arg0 : i32, i32
  }
}

</mosaic_0001>

<bundles_post_ra>
// kernel: bert_mlp_forward.1
= control target key start
LH: loop header
LB: loop body
LE: loop exit
PB: predicated region body
PF: predicated region fallthrough
CT: control target
= control target key end

     0   :  { %s812_s0 = inlined_call_operand.vmem [shape: bf16[2,128], index: 0, kind: input, shape index: {}]   ;;  %s813_s1 = inlined_call_operand.vmem [shape: bf16[2,128], index: 1, kind: input, shape index: {}]   ;;  %s814_s2 = inlined_call_operand.hbm [shape: bf16[256,128], index: 2, kind: input, shape index: {}]   ;;  %s815_s3 = inlined_call_operand.vmem [shape: f32[1,128], index: 3, kind: input, shape index: {}]   ;;  %s816_s4 = inlined_call_operand.vmem [shape: bf16[128,128], index: 4, kind: input, shape index: {}]   ;;  %s817_s5 = inlined_call_operand.vmem [shape: f32[1,128], index: 5, kind: input, shape index: {}]   ;;  %s818_s6 = inlined_call_operand.vmem [shape: bf16[1,128], index: 6, kind: input, shape index: {}]   ;;  %s819_s7 = inlined_call_operand.<no memory space> [shape: f32[1,1], index: 7, kind: input, shape index: {}]   ;;  %s820_s8 = inlined_call_operand.hbm [shape: f32[1,2], index: 8, kind: output, shape index: {}]  }
   0x1   :  { %v13_v0 = vstv %s819_s7 }
   0x2   :  { %14 = vst [vmem:[#allocation2] sm:$0x1] %v13_v0 }
   0x3   :  { %15 = vsyncpa [#allocation4], 0 }
   0x4   :  { %16 = vsyncpa [#allocation5], 0  ;;  %s661_s29 = smov [#allocation3]   ;;  %s613_s11 = scalar_lea.hbm %s814_s2, 2048 }
   0x5   :  { %s26_s30 = sshll.u32 %s661_s29, 4  ;;  %p614_p0 = scmp.ne.s32.totalorder %s814_s2, %s613_s11  ;;  %s27_s30 = int_to_ptr.vmem [resolvable:$true] %s26_s30 }
   0x6   :  { %p617_p1 = scmp.lt.u32.totalorder %s613_s11, %s814_s2 }
   0x8   :  { %p619_p2 = pnand %p617_p1, %p614_p0 }
   0xa   :  { %622 = shalt.err (!%p619_p2)
}
   0xb   :  { %s623_s7 = scalar_lea.vmem %s27_s30, 2048  ;;  %p628_p4 = scmp.lt.s32.totalorder %s27_s30, %s27_s30 }
   0xc   :  { %p624_p3 = scmp.ne.s32.totalorder %s27_s30, %s623_s7  ;;  %p629_p5 = scmp.lt.s32.totalorder %s623_s7, %s623_s7 }
   0xe   :  { %p630_p6 = por %p629_p5, %p628_p4 }
  0x10   :  { %p631_p7 = pnand %p630_p6, %p624_p3 }
  0x12   :  { %634 = shalt.err (!%p631_p7)
}
  0x13   :  { %s662_s16 = smov 64   ;;  %s663_s17 = smov 4  }
  0x14   :  { %32 = dma.hbm_to_vmem [thread:$0]  %s814_s2, 2048, %s27_s30, [#allocation4], %s662_s16, %s662_s16, %s663_s17  }
  0x15   :  { %657 = dma.done.wait [#allocation4], 2048  }
  0x16   :  { %658 = vsyncadd [#allocation4], 4294965248  ;;  %v664_v1 = vmov 0.0   ;;  %vm665_vm0 = vmmov 0   ;;  %v583_v2 = vld [vmem:[#allocation3 + $0x40] sm:$0xff]   ;;  %v585_v4 = vld [vmem:[#allocation3 + $0x48] sm:$0xff]   ;;  %v386_v51 = vlaneseq }
  0x17   :  { %509 = vmatprep.subr.bf16.mxu0 %v664_v1  ;;  %529 = vmatprep.subr.bf16.mxu1 %v664_v1  ;;  %v584_v3 = vld [vmem:[#allocation3] sm:$0xff]   ;;  %v586_v5 = vld [vmem:[#allocation3 + $0x8] sm:$0xff]   ;;  %v587_v6 = vld [vmem:[#allocation3 + $0x50] sm:$0xff]   ;;  %v666_v41 = vmov 0   ;;  %vm436_vm1 = vcmask 8192  }
  0x18   :  { %525 = vmatprep.mubr.msk.bf16.mxu0 %vm665_vm0, %v664_v1  ;;  %545 = vmatprep.mubr.msk.bf16.mxu1 %vm665_vm0, %v664_v1  ;;  %v588_v7 = vld [vmem:[#allocation3 + $0x10] sm:$0xff]   ;;  %v589_v8 = vld [vmem:[#allocation3 + $0x58] sm:$0xff]   ;;  %v591_v10 = vld [vmem:[#allocation3 + $0x60] sm:$0xff]   ;;  %v387_v52 = vshrl.u32 %v386_v51, 7 }
  0x19   :  { %510 = vmatpush3.bf16.msra.mxu0 %v583_v2  ;;  %530 = vmatpush3.bf16.msra.mxu1 %v584_v3  ;;  %v590_v9 = vld [vmem:[#allocation3 + $0x18] sm:$0xff]   ;;  %v592_v11 = vld [vmem:[#allocation3 + $0x20] sm:$0xff]   ;;  %v593_v12 = vld [vmem:[#allocation3 + $0x68] sm:$0xff]  }
  0x1a   :  { %511 = vmatprep.subr.bf16.mxu0 %v664_v1  ;;  %531 = vmatprep.subr.bf16.mxu1 %v664_v1  ;;  %v594_v13 = vld [vmem:[#allocation3 + $0x28] sm:$0xff]   ;;  %v595_v14 = vld [vmem:[#allocation3 + $0x70] sm:$0xff]   ;;  %v597_v16 = vld [vmem:[#allocation3 + $0x78] sm:$0xff]   ;;  %v388_v53 = vsub.s32 0, %v387_v52 }
  0x1b   :  { %v596_v15 = vld [vmem:[#allocation3 + $0x30] sm:$0xff]   ;;  %v598_v17 = vld [vmem:[#allocation3 + $0x38] sm:$0xff]   ;;  %v600_v21 = vld [vmem:[%s816_s4 + $0x8] sm:$0xff]   ;;  %582 = vset.pattern.permute.xlu0 %v666_v41 }
  0x1c   :  { %v64_v18 = vld [vmem:[%s813_s1] sm:$0x1]  ;;  %v601_v22 = vld [vmem:[%s816_s4 + $0x10] sm:$0xff]   ;;  %v602_v23 = vld [vmem:[%s816_s4 + $0x18] sm:$0xff]  }
  0x1d   :  { %512 = vmatpush3.bf16.msra.mxu0 %v585_v4  ;;  %532 = vmatpush3.bf16.msra.mxu1 %v586_v5  ;;  %v599_v19 = vld [vmem:[%s816_s4] sm:$0xff]   ;;  %v604_v25 = vld [vmem:[%s816_s4 + $0x28] sm:$0xff]   ;;  %v605_v26 = vld [vmem:[%s816_s4 + $0x30] sm:$0xff]  }
  0x1e   :  { %513 = vmatprep.subr.bf16.mxu0 %v664_v1  ;;  %533 = vmatprep.subr.bf16.mxu1 %v664_v1  ;;  %v47_v20 = vld [vmem:[%s812_s0] sm:$0x1]  ;;  %v606_v27 = vld [vmem:[%s816_s4 + $0x38] sm:$0xff]  }
  0x1f   :  { %v603_v24 = vld [vmem:[%s816_s4 + $0x20] sm:$0xff]  }
  0x20   :  { %v469_v30 = vld [vmem:[%s815_s3] ss:$0 sm:$0xff] }
  0x21   :  { %514 = vmatpush3.bf16.msra.mxu0 %v587_v6  ;;  %534 = vmatpush3.bf16.msra.mxu1 %v588_v7  ;;  %v380_v40 = vld [vmem:[#allocation2] sm:$0x1] }
  0x22   :  { %515 = vmatprep.subr.bf16.mxu0 %v664_v1  ;;  %535 = vmatprep.subr.bf16.mxu1 %v664_v1  ;;  %v470_v42 = vld [vmem:[%s817_s5] ss:$0 sm:$0xff]  ;;  %s667_s5 = smov [#allocation6]  }
  0x23   :  { %383 = vperm.xlu0 %582, %v380_v40   ;;  %v378_v50 = vld [vmem:[%s818_s6] sm:$0x1]  ;;  %s444_s18 = sshll.u32 %s667_s5, 4  ;;  %s445_s18 = int_to_ptr.vmem [resolvable:$true] %s444_s18 }
  0x24   :  { %s635_s6 = scalar_lea.vmem %s445_s18, 16  ;;  %s639_s19 = scalar_lea.vmem %s445_s18, 32 }
  0x25   :  { %516 = vmatpush3.bf16.msra.mxu0 %v589_v8  ;;  %536 = vmatpush3.bf16.msra.mxu1 %v590_v9  ;;  %p636_p8 = scmp.ne.s32.totalorder %s445_s18, %s635_s6  ;;  %p640_p9 = scmp.lt.s32.totalorder %s445_s18, %s445_s18 }
  0x26   :  { %517 = vmatprep.subr.bf16.mxu0 %v664_v1  ;;  %537 = vmatprep.subr.bf16.mxu1 %v664_v1  ;;  %p641_p10 = scmp.lt.s32.totalorder %s639_s19, %s635_s6 }
  0x28   :  { %p642_p11 = por %p641_p10, %p640_p9 }
  0x29   :  { %518 = vmatpush3.bf16.msra.mxu0 %v591_v10  ;;  %538 = vmatpush3.bf16.msra.mxu1 %v592_v11 }
  0x2a   :  { %519 = vmatprep.subr.bf16.mxu0 %v664_v1  ;;  %539 = vmatprep.subr.bf16.mxu1 %v664_v1  ;;  %p643_p12 = pnand %p642_p11, %p636_p8 }
  0x2d   :  { %520 = vmatpush3.bf16.msra.mxu0 %v593_v12  ;;  %540 = vmatpush3.bf16.msra.mxu1 %v594_v13 }
  0x2e   :  { %521 = vmatprep.subr.bf16.mxu0 %v664_v1  ;;  %541 = vmatprep.subr.bf16.mxu1 %v664_v1 }
  0x31   :  { %522 = vmatpush3.bf16.msra.mxu0 %v595_v14  ;;  %542 = vmatpush3.bf16.msra.mxu1 %v596_v15 }
  0x32   :  { %523 = vmatprep.subr.bf16.mxu0 %v664_v1  ;;  %543 = vmatprep.subr.bf16.mxu1 %v664_v1 }
  0x35   :  { %524 = vmatpush3.bf16.msra.mxu0 %v597_v16  ;;  %544 = vmatpush3.bf16.msra.mxu1 %v598_v17 }
  0x36   :  { %549 = vmatprep.subr.bf16.mxu0 %v664_v1  ;;  %569 = vmatprep.subr.bf16.mxu1 %v664_v1 }
  0x38   :  { %526 = vmatmul.mubr.bf16.vlgmr.msra.gmra.mrb[0].mxu0 %v64_v18  ;;  %546 = vmatmul.mubr.bf16.vlgmr.msra.gmra.mrb[0].mxu1 %v47_v20 }
  0x39   :  { %550 = vmatpush3.bf16.msra.mxu0 %v599_v19  ;;  %565 = vmatprep.mubr.msk.bf16.mxu0 %vm665_vm0, %v664_v1 }
  0x3a   :  { %551 = vmatprep.subr.bf16.mxu0 %v664_v1  ;;  %571 = vmatprep.mubr.msk.bf16.mxu1 %vm665_vm0, %v664_v1 }
  0x3d   :  { %552 = vmatpush3.bf16.msra.mxu0 %v600_v21 }
  0x3e   :  { %553 = vmatprep.subr.bf16.mxu0 %v664_v1 }
  0x41   :  { %554 = vmatpush3.bf16.msra.mxu0 %v601_v22 }
  0x42   :  { %555 = vmatprep.subr.bf16.mxu0 %v664_v1 }
  0x45   :  { %556 = vmatpush3.bf16.msra.mxu0 %v602_v23 }
  0x46   :  { %557 = vmatprep.subr.bf16.mxu0 %v664_v1 }
  0x49   :  { %558 = vmatpush3.bf16.msra.mxu0 %v603_v24 }
  0x4a   :  { %559 = vmatprep.subr.bf16.mxu0 %v664_v1 }
  0x4d   :  { %560 = vmatpush3.bf16.msra.mxu0 %v604_v25 }
  0x4e   :  { %561 = vmatprep.subr.bf16.mxu0 %v664_v1 }
  0x51   :  { %562 = vmatpush3.bf16.msra.mxu0 %v605_v26 }
  0x52   :  { %563 = vmatprep.subr.bf16.mxu0 %v664_v1 }
  0x55   :  { %564 = vmatpush3.bf16.msra.mxu0 %v606_v27 }
  0xa2   :  { %v384_v54 = vpop.permute.xlu0 %383 }
  0xa3   :  { %v389_v55 = vrot.slane %v384_v54, %v388_v53 }
 0x10b   :  { %v163_v28 = vpop.f32.mrb[0].mxu0  ;;  %v251_v29 = vpop.f32.mrb[0].mxu1 }
 0x10c   :  { %v527_v31 = vpop.f32.mrb[1].mxu0  ;;  %v252_v32 = vadd.f32 %v251_v29, %v163_v28  ;;  %v547_v33 = vpop.f32.mrb[1].mxu1 }
 0x10d   :  { %v166_v34 = vpop.f32.mrb[2].mxu0  ;;  %v254_v35 = vpop.f32.mrb[2].mxu1 }
 0x10e   :  { %v528_v36 = vpop.f32.mrb[3].mxu0  ;;  %v264_v37 = vadd.f32 %v469_v30, %v252_v32  ;;  %v548_v38 = vpop.f32.mrb[3].mxu1 }
 0x110   :  { %v265_v39 = vpack.c.bf16 %v264_v37, %v264_v37 }
 0x112   :  { %566 = vmatmul.mubr.bf16.vlgmr.msra.gmra.mrb[4].mxu0 %v265_v39 }
 0x1e5   :  { %v371_v43 = vpop.f32.mrb[4].mxu0 }
 0x1e6   :  { %v372_v44 = vadd.f32 %v470_v42, %v371_v43  ;;  %v567_v45 = vpop.f32.mrb[5].mxu0 }
 0x1e7   :  { %v374_v46 = vpop.f32.mrb[6].mxu0 }
 0x1e8   :  { %607 = vtanh.f32 %v372_v44  ;;  %v568_v47 = vpop.f32.mrb[7].mxu0 }
 0x1f2   :  { %v608_v48 = vpop.eup %607 }
 0x1f3   :  { %v379_v49 = vpack.c.bf16 %v608_v48, %v608_v48 }
 0x1f5   :  { %570 = vmatpush3.bf16.xpose.msra.mxu1 %v379_v49 }
 0x1fc   :  { %572 = vmatmul.mubr.bf16.vlgmr.msra.gmra.mrb[4].mxu1 %v378_v50 }
 0x2cf   :  { %v424_v56 = vpop.f32.mrb[4].mxu1 }
 0x2d0   :  { %v425_v57 = vadd.f32 %v424_v56, %v389_v55  ;;  %v573_v58 = vpop.f32.mrb[5].mxu1 }
 0x2d1   :  { %v427_v59 = vpop.f32.mrb[6].mxu1 }
 0x2d2   :  { %v479_v60 = vmul.f32 -1.442695, %v425_v57  ;;  %v574_v61 = vpop.f32.mrb[7].mxu1 }
 0x2d4   :  { %609 = vpow2.f32 %v479_v60 }
 0x2de   :  { %v610_v62 = vpop.eup %609 }
 0x2df   :  { %v433_v63 = vadd.f32 1.0, %v610_v62 }
 0x2e1   :  { %611 = vrcp.f32 %v433_v63 }
 0x2eb   :  { %v612_v0 = vpop.eup %611 }
 0x2ec   :  { %437 = vst.msk [vmem:[#allocation6] sm:$0x1] %vm436_vm1, %v612_v0 }
 0x2ed   :  { %646 = shalt.err (!%p643_p12)
}
 0x2ee   :  { %s647_s21 = scalar_lea.hbm %s820_s8, 16 }
 0x2ef   :  { %p648_p13 = scmp.ne.s32.totalorder %s820_s8, %s647_s21  ;;  %p651_p0 = scmp.lt.u32.totalorder %s647_s21, %s820_s8 }
 0x2f1   :  { %p653_p1 = pnand %p651_p0, %p648_p13 }
 0x2f3   :  { %656 = shalt.err (!%p653_p1)
}
 0x2f4   :  { %447 = dma.vmem_to_hbm [thread:$0]  %s445_s18, 16, %s820_s8, [#allocation5]  }
 0x2f5   :  { %659 = dma.done.wait [#allocation5], 16  }
 0x2f6   :  { %660 = vsyncadd [#allocation5], 4294967280 }
 0x2f7   :  { %451 = vsyncpa [#allocation4], 1 }
 0x2f8   :  { %452 = vsyncpa [#allocation5], 1 }

</bundles_post_ra>
